<compile_context>
chip_gen: v6e
topology: v6e:2x2x1
jax: 0.10.0
libtpu: 0.0.40
codegen_flags: <defaults>
</compile_context>

<pallas_src>
import jax
import jax.numpy as jnp
from jax.experimental import pallas as pl
from jax.experimental.pallas import tpu as pltpu

IN_SIZE = 4      # CartPole-v0 observation dim
OUT_SIZE = 2     # CartPole-v0 action count
H1, H2, H3 = 300, 150, 75

# Lane-dense (multiple-of-128) padded feature sizes per layer.
H1_P, H2_P, H3_P, OUT_P = 384, 256, 128, 128
W1_ROWS = 8                      # fc1 K rows padded 4 -> 8 (f32 sublane tile)

_TB_MAX = 1024                   # max batch rows per grid step


def _round_up(a, m):
    return ((a + m - 1) // m) * m


def _choose_tiling(batch):
    """Pick (tile_rows, num_tiles) for the batch axis."""
    b8 = _round_up(max(batch, 1), 8)
    if b8 <= 8:
        return b8, 1                               # single tiny tile
    # >= 2 tiles so both v7x TensorCores get work; cap tile at _TB_MAX rows.
    nb = max(2, -(-b8 // _TB_MAX))
    tb = _round_up(-(-b8 // nb), 8)
    return tb, nb


def critic_kernel(x_ref, w1_ref, b1_ref, w2_ref, b2_ref, w3_ref, b3_ref,
                  wo_ref, bo_ref, out_ref):
    x = x_ref[...]                                             # (TB, 4) f32

    # --- fc1 on the VPU: 4 broadcast multiply-adds (avoids a zero-K matmul) ---
    h = b1_ref[...] + x[:, 0:1] * w1_ref[0:1, :]               # (TB, 384) f32
    for j in range(1, IN_SIZE):
        h = h + x[:, j:j + 1] * w1_ref[j:j + 1, :]
    h = jnp.maximum(h, 0.0)

    # --- fc2 / fc3 / out on the MXU: bf16 inputs, f32 accumulation ---
    h = jnp.dot(h.astype(jnp.bfloat16), w2_ref[...],
                preferred_element_type=jnp.float32) + b2_ref[...]
    h = jnp.maximum(h, 0.0)                                    # (TB, 256)
    h = jnp.dot(h.astype(jnp.bfloat16), w3_ref[...],
                preferred_element_type=jnp.float32) + b3_ref[...]
    h = jnp.maximum(h, 0.0)                                    # (TB, 128)
    h = jnp.dot(h.astype(jnp.bfloat16), wo_ref[...],
                preferred_element_type=jnp.float32) + bo_ref[...]

    # Narrow store: only the 2 real action-value lanes go back to HBM.
    out_ref[...] = h[:, :OUT_SIZE]                             # (TB, 2) f32


def critic_forward(x, packed):
    """x: (B, IN_SIZE) f32 -> (B, OUT_SIZE) f32."""
    B = x.shape[0]
    tb, nb = _choose_tiling(B)
    b_pad = tb * nb
    if b_pad == B:
        x_pad = x
    else:
        x_pad = jnp.zeros((b_pad, IN_SIZE), x.dtype).at[:B].set(x)

    w1p, b1p, w2p, b2p, w3p, b3p, wop, bop = packed

    def const(shape):
        return pl.BlockSpec(shape, lambda i: (0, 0))

    out = pl.pallas_call(
        critic_kernel,
        out_shape=jax.ShapeDtypeStruct((b_pad, OUT_SIZE), jnp.float32),
        grid=(nb,),
        in_specs=[
            pl.BlockSpec((tb, IN_SIZE), lambda i: (i, 0)),   # x batch tile
            const((W1_ROWS, H1_P)), const((1, H1_P)),        # fc1 (f32)
            const((H1_P, H2_P)),    const((1, H2_P)),        # fc2 (bf16 W)
            const((H2_P, H3_P)),    const((1, H3_P)),        # fc3 (bf16 W)
            const((H3_P, OUT_P)),   const((1, OUT_P)),       # out (bf16 W)
        ],
        out_specs=pl.BlockSpec((tb, OUT_SIZE), lambda i: (i, 0)),
        compiler_params=pltpu.CompilerParams(
            dimension_semantics=("parallel",)),
    )(x_pad, w1p, b1p, w2p, b2p, w3p, b3p, wop, bop)
    return out[:B]


# ---------------------------------------------------------------------------
# Parameter construction (matches the PyTorch init) and padding/packing.
# ---------------------------------------------------------------------------

def xavier_uniform(key, fan_in, fan_out):
    # matches torch.nn.init.xavier_uniform_ (gain=1), returned as (in, out)
    bound = (6.0 / (fan_in + fan_out)) ** 0.5
    return jax.random.uniform(key, (fan_in, fan_out), jnp.float32, -bound, bound)


def init_params(key):
    k1, k2, k3, k4, kb = jax.random.split(key, 5)
    w1 = xavier_uniform(k1, IN_SIZE, H1)
    b1 = jnp.full((H1,), 0.01, jnp.float32)
    w2 = xavier_uniform(k2, H1, H2)
    b2 = jnp.full((H2,), 0.01, jnp.float32)
    w3 = xavier_uniform(k3, H2, H3)
    b3 = jnp.full((H3,), 0.01, jnp.float32)
    wo = xavier_uniform(k4, H3, OUT_SIZE)
    # `out` bias keeps PyTorch's default Linear init: U(-1/sqrt(fan_in), +)
    bo_bound = 1.0 / (H3 ** 0.5)
    bo = jax.random.uniform(kb, (OUT_SIZE,), jnp.float32, -bo_bound, bo_bound)
    return (w1, b1, w2, b2, w3, b3, wo, bo)


def pack_params(params):
    """Per-layer lane-dense zero padding (no cross-layer packing waste)."""
    w1, b1, w2, b2, w3, b3, wo, bo = params
    w1p = jnp.zeros((W1_ROWS, H1_P), jnp.float32).at[:IN_SIZE, :H1].set(w1)
    b1p = jnp.zeros((1, H1_P), jnp.float32).at[0, :H1].set(b1)
    w2p = jnp.zeros((H1_P, H2_P), jnp.float32).at[:H1, :H2].set(w2).astype(jnp.bfloat16)
    b2p = jnp.zeros((1, H2_P), jnp.float32).at[0, :H2].set(b2)
    w3p = jnp.zeros((H2_P, H3_P), jnp.float32).at[:H2, :H3].set(w3).astype(jnp.bfloat16)
    b3p = jnp.zeros((1, H3_P), jnp.float32).at[0, :H3].set(b3)
    wop = jnp.zeros((H3_P, OUT_P), jnp.float32).at[:H3, :OUT_SIZE].set(wo).astype(jnp.bfloat16)
    bop = jnp.zeros((1, OUT_P), jnp.float32).at[0, :OUT_SIZE].set(bo)
    return (w1p, b1p, w2p, b2p, w3p, b3p, wop, bop)


# ---------------------------------------------------------------------------
# References.
# ---------------------------------------------------------------------------

def reference_forward_matched(x, packed):
    """Same numerics as the kernel (f32 fc1, bf16 MXU inputs, f32 accum)."""
    w1p, b1p, w2p, b2p, w3p, b3p, wop, bop = packed
    h = b1p + x[:, 0:1] * w1p[0:1, :]
    for j in range(1, IN_SIZE):
        h = h + x[:, j:j + 1] * w1p[j:j + 1, :]
    h = jnp.maximum(h, 0.0)
    h = jnp.dot(h.astype(jnp.bfloat16), w2p, preferred_element_type=jnp.float32) + b2p
    h = jnp.maximum(h, 0.0)
    h = jnp.dot(h.astype(jnp.bfloat16), w3p, preferred_element_type=jnp.float32) + b3p
    h = jnp.maximum(h, 0.0)
    h = jnp.dot(h.astype(jnp.bfloat16), wop, preferred_element_type=jnp.float32) + bop
    return h[:, :OUT_SIZE]


def reference_forward_f32(x, params):
    """Full-f32 PyTorch-equivalent math."""
    w1, b1, w2, b2, w3, b3, wo, bo = params
    h = jnp.maximum(x @ w1 + b1, 0.0)
    h = jnp.maximum(h @ w2 + b2, 0.0)
    h = jnp.maximum(h @ w3 + b3, 0.0)
    return h @ wo + bo


if __name__ == "__main__":
    key = jax.random.PRNGKey(0)
    kx1, kx2, kp = jax.random.split(key, 3)

    params = init_params(kp)
    packed = pack_params(params)

    # Small batch: single right-sized tile (no forced 128-row padding).
    B1 = 8
    x1 = jax.random.normal(kx1, (B1, IN_SIZE), jnp.float32)
    out1 = jax.block_until_ready(critic_forward(x1, packed))
    assert out1.shape == (B1, OUT_SIZE)

    # Larger batch: exercises batch padding and the 2-tile "parallel" grid.
    B2 = 200
    x2 = jax.random.normal(kx2, (B2, IN_SIZE), jnp.float32)
    out2 = jax.block_until_ready(critic_forward(x2, packed))
    assert out2.shape == (B2, OUT_SIZE)

    for x, out in ((x1, out1), (x2, out2)):
        ref_m = reference_forward_matched(x, packed)
        assert jnp.allclose(out, ref_m, atol=1e-2, rtol=1e-2), \
            "mismatch vs numerics-matched JAX reference"
        ref_f = reference_forward_f32(x, params)
        assert jnp.allclose(out, ref_f, atol=5e-2, rtol=5e-2), \
            "mismatch vs f32 reference beyond bf16 tolerance"

    print("KERNEL_OK")
</pallas_src>

<mosaic_0001>
module attributes {stable_mosaic.version = 11 : i64} {
  func.func @critic_kernel(%arg0: i32, %arg1: memref<8x4xf32, #tpu.memory_space<vmem>>, %arg2: memref<8x384xf32, #tpu.memory_space<vmem>>, %arg3: memref<1x384xf32, #tpu.memory_space<vmem>>, %arg4: memref<384x256xbf16, #tpu.memory_space<vmem>>, %arg5: memref<1x256xf32, #tpu.memory_space<vmem>>, %arg6: memref<256x128xbf16, #tpu.memory_space<vmem>>, %arg7: memref<1x128xf32, #tpu.memory_space<vmem>>, %arg8: memref<128x128xbf16, #tpu.memory_space<vmem>>, %arg9: memref<1x128xf32, #tpu.memory_space<vmem>>, %arg10: memref<8x2xf32, #tpu.memory_space<vmem>>) attributes {dimension_semantics = [#tpu.dimension_semantics<parallel>], iteration_bounds = array<i64: 1>, scalar_prefetch = 0 : i64, scratch_operands = 0 : i64, tpu.core_type = #tpu.core_type<tc>, window_params = [{transform_indices = @transform_0, window_bounds = array<i64: 8, 4>}, {pipeline_mode = #tpu.pipeline_mode<synchronous>, transform_indices = @transform_1, window_bounds = array<i64: 8, 384>}, {pipeline_mode = #tpu.pipeline_mode<synchronous>, transform_indices = @transform_2, window_bounds = array<i64: 1, 384>}, {pipeline_mode = #tpu.pipeline_mode<synchronous>, transform_indices = @transform_3, window_bounds = array<i64: 384, 256>}, {pipeline_mode = #tpu.pipeline_mode<synchronous>, transform_indices = @transform_4, window_bounds = array<i64: 1, 256>}, {pipeline_mode = #tpu.pipeline_mode<synchronous>, transform_indices = @transform_5, window_bounds = array<i64: 256, 128>}, {pipeline_mode = #tpu.pipeline_mode<synchronous>, transform_indices = @transform_6, window_bounds = array<i64: 1, 128>}, {pipeline_mode = #tpu.pipeline_mode<synchronous>, transform_indices = @transform_7, window_bounds = array<i64: 128, 128>}, {pipeline_mode = #tpu.pipeline_mode<synchronous>, transform_indices = @transform_8, window_bounds = array<i64: 1, 128>}, {transform_indices = @transform_9, window_bounds = array<i64: 8, 2>}]} {
    %c0 = arith.constant 0 : index
    %c0_0 = arith.constant 0 : index
    %0 = vector.load %arg1[%c0, %c0_0] : memref<8x4xf32, #tpu.memory_space<vmem>>, vector<8x4xf32>
    %c0_1 = arith.constant 0 : index
    %c0_2 = arith.constant 0 : index
    %1 = vector.load %arg3[%c0_1, %c0_2] : memref<1x384xf32, #tpu.memory_space<vmem>>, vector<1x384xf32>
    %2 = vector.extract_strided_slice %0 {offsets = [0, 0], sizes = [8, 1], strides = [1, 1]} : vector<8x4xf32> to vector<8x1xf32>
    %c0_3 = arith.constant 0 : index
    %c0_4 = arith.constant 0 : index
    %3 = vector.load %arg2[%c0_3, %c0_4] : memref<8x384xf32, #tpu.memory_space<vmem>>, vector<1x384xf32>
    %4 = vector.broadcast %2 : vector<8x1xf32> to vector<8x384xf32>
    %5 = vector.broadcast %3 : vector<1x384xf32> to vector<8x384xf32>
    %6 = arith.mulf %4, %5 : vector<8x384xf32>
    %7 = vector.broadcast %1 : vector<1x384xf32> to vector<8x384xf32>
    %8 = arith.addf %7, %6 : vector<8x384xf32>
    %9 = vector.extract_strided_slice %0 {offsets = [0, 1], sizes = [8, 1], strides = [1, 1]} : vector<8x4xf32> to vector<8x1xf32>
    %c1 = arith.constant 1 : index
    %c0_5 = arith.constant 0 : index
    %10 = vector.load %arg2[%c1, %c0_5] : memref<8x384xf32, #tpu.memory_space<vmem>>, vector<1x384xf32>
    %11 = vector.broadcast %9 : vector<8x1xf32> to vector<8x384xf32>
    %12 = vector.broadcast %10 : vector<1x384xf32> to vector<8x384xf32>
    %13 = arith.mulf %11, %12 : vector<8x384xf32>
    %14 = arith.addf %8, %13 : vector<8x384xf32>
    %15 = vector.extract_strided_slice %0 {offsets = [0, 2], sizes = [8, 1], strides = [1, 1]} : vector<8x4xf32> to vector<8x1xf32>
    %c2 = arith.constant 2 : index
    %c0_6 = arith.constant 0 : index
    %16 = vector.load %arg2[%c2, %c0_6] : memref<8x384xf32, #tpu.memory_space<vmem>>, vector<1x384xf32>
    %17 = vector.broadcast %15 : vector<8x1xf32> to vector<8x384xf32>
    %18 = vector.broadcast %16 : vector<1x384xf32> to vector<8x384xf32>
    %19 = arith.mulf %17, %18 : vector<8x384xf32>
    %20 = arith.addf %14, %19 : vector<8x384xf32>
    %21 = vector.extract_strided_slice %0 {offsets = [0, 3], sizes = [8, 1], strides = [1, 1]} : vector<8x4xf32> to vector<8x1xf32>
    %c3 = arith.constant 3 : index
    %c0_7 = arith.constant 0 : index
    %22 = vector.load %arg2[%c3, %c0_7] : memref<8x384xf32, #tpu.memory_space<vmem>>, vector<1x384xf32>
    %23 = vector.broadcast %21 : vector<8x1xf32> to vector<8x384xf32>
    %24 = vector.broadcast %22 : vector<1x384xf32> to vector<8x384xf32>
    %25 = arith.mulf %23, %24 : vector<8x384xf32>
    %26 = arith.addf %20, %25 : vector<8x384xf32>
    %cst = arith.constant 0.000000e+00 : f32
    %27 = vector.broadcast %cst : f32 to vector<8x384xf32>
    %28 = arith.maximumf %26, %27 : vector<8x384xf32>
    %29 = arith.truncf %28 : vector<8x384xf32> to vector<8x384xbf16>
    %c0_8 = arith.constant 0 : index
    %c0_9 = arith.constant 0 : index
    %30 = vector.load %arg4[%c0_8, %c0_9] : memref<384x256xbf16, #tpu.memory_space<vmem>>, vector<384x256xbf16>
    %cst_10 = arith.constant dense<0.000000e+00> : vector<8x256xf32>
    %31 = tpu.matmul %29, %30, %cst_10 {dimension_numbers = #tpu.dot_dimension_numbers<[1], [0], [0], [1], [0, 0, 1, 1], [], []>} : vector<8x384xbf16>, vector<384x256xbf16>, vector<8x256xf32> -> vector<8x256xf32>
    %c0_11 = arith.constant 0 : index
    %c0_12 = arith.constant 0 : index
    %32 = vector.load %arg5[%c0_11, %c0_12] : memref<1x256xf32, #tpu.memory_space<vmem>>, vector<1x256xf32>
    %33 = vector.broadcast %32 : vector<1x256xf32> to vector<8x256xf32>
    %34 = arith.addf %31, %33 : vector<8x256xf32>
    %cst_13 = arith.constant 0.000000e+00 : f32
    %35 = vector.broadcast %cst_13 : f32 to vector<8x256xf32>
    %36 = arith.maximumf %34, %35 : vector<8x256xf32>
    %37 = arith.truncf %36 : vector<8x256xf32> to vector<8x256xbf16>
    %c0_14 = arith.constant 0 : index
    %c0_15 = arith.constant 0 : index
    %38 = vector.load %arg6[%c0_14, %c0_15] : memref<256x128xbf16, #tpu.memory_space<vmem>>, vector<256x128xbf16>
    %cst_16 = arith.constant dense<0.000000e+00> : vector<8x128xf32>
    %39 = tpu.matmul %37, %38, %cst_16 {dimension_numbers = #tpu.dot_dimension_numbers<[1], [0], [0], [1], [0, 0, 1, 1], [], []>} : vector<8x256xbf16>, vector<256x128xbf16>, vector<8x128xf32> -> vector<8x128xf32>
    %c0_17 = arith.constant 0 : index
    %c0_18 = arith.constant 0 : index
    %40 = vector.load %arg7[%c0_17, %c0_18] : memref<1x128xf32, #tpu.memory_space<vmem>>, vector<1x128xf32>
    %41 = vector.broadcast %40 : vector<1x128xf32> to vector<8x128xf32>
    %42 = arith.addf %39, %41 : vector<8x128xf32>
    %cst_19 = arith.constant 0.000000e+00 : f32
    %43 = vector.broadcast %cst_19 : f32 to vector<8x128xf32>
    %44 = arith.maximumf %42, %43 : vector<8x128xf32>
    %45 = arith.truncf %44 : vector<8x128xf32> to vector<8x128xbf16>
    %c0_20 = arith.constant 0 : index
    %c0_21 = arith.constant 0 : index
    %46 = vector.load %arg8[%c0_20, %c0_21] : memref<128x128xbf16, #tpu.memory_space<vmem>>, vector<128x128xbf16>
    %cst_22 = arith.constant dense<0.000000e+00> : vector<8x128xf32>
    %47 = tpu.matmul %45, %46, %cst_22 {dimension_numbers = #tpu.dot_dimension_numbers<[1], [0], [0], [1], [0, 0, 1, 1], [], []>} : vector<8x128xbf16>, vector<128x128xbf16>, vector<8x128xf32> -> vector<8x128xf32>
    %c0_23 = arith.constant 0 : index
    %c0_24 = arith.constant 0 : index
    %48 = vector.load %arg9[%c0_23, %c0_24] : memref<1x128xf32, #tpu.memory_space<vmem>>, vector<1x128xf32>
    %49 = vector.broadcast %48 : vector<1x128xf32> to vector<8x128xf32>
    %50 = arith.addf %47, %49 : vector<8x128xf32>
    %51 = vector.extract_strided_slice %50 {offsets = [0, 0], sizes = [8, 2], strides = [1, 1]} : vector<8x128xf32> to vector<8x2xf32>
    %c0_25 = arith.constant 0 : index
    %c0_26 = arith.constant 0 : index
    %52 = vector.load %arg10[%c0_25, %c0_26] : memref<8x2xf32, #tpu.memory_space<vmem>>, vector<8x2xf32>
    tpu.vector_store %arg10[%c0_25, %c0_26], %51 {strides = array<i32>} : memref<8x2xf32, #tpu.memory_space<vmem>>, vector<8x2xf32>,
    return
  }
  func.func @transform_0(%arg0: i32) -> (i32, i32) {
    %c0_i32 = arith.constant 0 : i32
    %c0_i32_0 = arith.constant 0 : i32
    return %arg0, %c0_i32 : i32, i32
  }
  func.func @transform_1(%arg0: i32) -> (i32, i32) {
    %c0_i32 = arith.constant 0 : i32
    %c0_i32_0 = arith.constant 0 : i32
    %c0_i32_1 = arith.constant 0 : i32
    return %c0_i32, %c0_i32_0 : i32, i32
  }
  func.func @transform_2(%arg0: i32) -> (i32, i32) {
    %c0_i32 = arith.constant 0 : i32
    %c0_i32_0 = arith.constant 0 : i32
    %c0_i32_1 = arith.constant 0 : i32
    return %c0_i32, %c0_i32_0 : i32, i32
  }
  func.func @transform_3(%arg0: i32) -> (i32, i32) {
    %c0_i32 = arith.constant 0 : i32
    %c0_i32_0 = arith.constant 0 : i32
    %c0_i32_1 = arith.constant 0 : i32
    return %c0_i32, %c0_i32_0 : i32, i32
  }
  func.func @transform_4(%arg0: i32) -> (i32, i32) {
    %c0_i32 = arith.constant 0 : i32
    %c0_i32_0 = arith.constant 0 : i32
    %c0_i32_1 = arith.constant 0 : i32
    return %c0_i32, %c0_i32_0 : i32, i32
  }
  func.func @transform_5(%arg0: i32) -> (i32, i32) {
    %c0_i32 = arith.constant 0 : i32
    %c0_i32_0 = arith.constant 0 : i32
    %c0_i32_1 = arith.constant 0 : i32
    return %c0_i32, %c0_i32_0 : i32, i32
  }
  func.func @transform_6(%arg0: i32) -> (i32, i32) {
    %c0_i32 = arith.constant 0 : i32
    %c0_i32_0 = arith.constant 0 : i32
    %c0_i32_1 = arith.constant 0 : i32
    return %c0_i32, %c0_i32_0 : i32, i32
  }
  func.func @transform_7(%arg0: i32) -> (i32, i32) {
    %c0_i32 = arith.constant 0 : i32
    %c0_i32_0 = arith.constant 0 : i32
    %c0_i32_1 = arith.constant 0 : i32
    return %c0_i32, %c0_i32_0 : i32, i32
  }
  func.func @transform_8(%arg0: i32) -> (i32, i32) {
    %c0_i32 = arith.constant 0 : i32
    %c0_i32_0 = arith.constant 0 : i32
    %c0_i32_1 = arith.constant 0 : i32
    return %c0_i32, %c0_i32_0 : i32, i32
  }
  func.func @transform_9(%arg0: i32) -> (i32, i32) {
    %c0_i32 = arith.constant 0 : i32
    %c0_i32_0 = arith.constant 0 : i32
    return %arg0, %c0_i32 : i32, i32
  }
}

</mosaic_0001>

<bundles_post_ra>
// kernel: tpu_custom_call.1
= control target key start
LH: loop header
LB: loop body
LE: loop exit
PB: predicated region body
PF: predicated region fallthrough
CT: control target
= control target key end

     0   :  { %14 = vsyncpa [#allocation3], 0  ;;  %s1341_s0 = inlined_call_operand.vmem [shape: f32[8,4], index: 0, kind: input, shape index: {}]   ;;  %s1342_s1 = inlined_call_operand.hbm [shape: f32[8,384], index: 1, kind: input, shape index: {}]   ;;  %s1343_s2 = inlined_call_operand.vmem [shape: f32[1,384], index: 2, kind: input, shape index: {}]   ;;  %s1344_s3 = inlined_call_operand.hbm [shape: bf16[384,256], index: 3, kind: input, shape index: {}]   ;;  %s1345_s4 = inlined_call_operand.vmem [shape: f32[1,256], index: 4, kind: input, shape index: {}]   ;;  %s1346_s5 = inlined_call_operand.hbm [shape: bf16[256,128], index: 5, kind: input, shape index: {}]   ;;  %s1347_s6 = inlined_call_operand.vmem [shape: f32[1,128], index: 6, kind: input, shape index: {}]   ;;  %s1348_s7 = inlined_call_operand.hbm [shape: bf16[128,128], index: 7, kind: input, shape index: {}]   ;;  %s1349_s8 = inlined_call_operand.vmem [shape: f32[1,128], index: 8, kind: input, shape index: {}]   ;;  %s1350_s9 = inlined_call_operand.vmem [shape: f32[8,2], index: 9, kind: output, shape index: {}]  }
   0x1   :  { %15 = vsyncpa [#allocation5], 0 }
   0x2   :  { %16 = vsyncpa [#allocation8], 0  ;;  %s1231_s30 = smov [#allocation4]  }
   0x3   :  { %s36_s10 = sshll.u32 %s1231_s30, 4  ;;  %s37_s10 = int_to_ptr.vmem [resolvable:$true] %s36_s10 }
   0x4   :  { %s1153_s11 = scalar_lea.vmem %s37_s10, 6144  ;;  %p1158_p1 = scmp.lt.s32.totalorder %s37_s10, %s37_s10 }
   0x5   :  { %p1154_p0 = scmp.ne.s32.totalorder %s37_s10, %s1153_s11  ;;  %p1159_p2 = scmp.lt.s32.totalorder %s1153_s11, %s1153_s11 }
   0x7   :  { %p1160_p3 = por %p1159_p2, %p1158_p1 }
   0x9   :  { %p1161_p4 = pnand %p1160_p3, %p1154_p0 }
   0xb   :  { %1164 = shalt.err (!%p1161_p4)
}
   0xc   :  { %s1232_s12 = smov 128   ;;  %s1233_s13 = smov 8  }
   0xd   :  { %42 = dma.hbm_to_vmem [thread:$0]  %s1344_s3, 6144, %s37_s10, [#allocation5], %s1232_s12, %s1232_s12, %s1233_s13  }
   0xe   :  { %s1234_s16 = smov [#allocation2]   ;;  %s1235_s18 = smov [#allocation6]  }
   0xf   :  { %s25_s17 = sshll.u32 %s1234_s16, 4  ;;  %s50_s19 = sshll.u32 %s1235_s18, 4  ;;  %s26_s17 = int_to_ptr.vmem [resolvable:$true] %s25_s17  ;;  %s51_s19 = int_to_ptr.vmem [resolvable:$true] %s50_s19 }
  0x10   :  { %s1173_s20 = scalar_lea.vmem %s26_s17, 384  ;;  %p1178_p6 = scmp.lt.s32.totalorder %s26_s17, %s26_s17 }
  0x11   :  { %p1174_p5 = scmp.ne.s32.totalorder %s26_s17, %s1173_s20  ;;  %p1179_p7 = scmp.lt.s32.totalorder %s1173_s20, %s1173_s20 }
  0x13   :  { %p1180_p8 = por %p1179_p7, %p1178_p6 }
  0x15   :  { %p1181_p9 = pnand %p1180_p8, %p1174_p5 }
  0x17   :  { %1184 = shalt.err (!%p1181_p9)
}
  0x18   :  { %28 = dma.hbm_to_vmem [thread:$0]  %s1342_s1, 384, %s26_s17, [#allocation3]  }
  0x19   :  { %s1193_s23 = scalar_lea.vmem %s51_s19, 2048  ;;  %p1198_p11 = scmp.lt.s32.totalorder %s51_s19, %s51_s19 }
  0x1a   :  { %p1194_p10 = scmp.ne.s32.totalorder %s51_s19, %s1193_s23  ;;  %p1199_p12 = scmp.lt.s32.totalorder %s1193_s23, %s1193_s23 }
  0x1c   :  { %p1200_p13 = por %p1199_p12, %p1198_p11 }
  0x1e   :  { %p1201_p0 = pnand %p1200_p13, %p1194_p10 }
  0x20   :  { %1204 = shalt.err (!%p1201_p0)
}
  0x21   :  { %s1236_s3 = smov 64   ;;  %s1237_s24 = smov 4  }
  0x22   :  { %56 = dma.hbm_to_vmem [thread:$0]  %s1346_s5, 2048, %s51_s19, [#allocation5], %s1236_s3, %s1236_s3, %s1237_s24  }
  0x23   :  { %s1238_s27 = smov [#allocation7]  }
  0x24   :  { %s64_s28 = sshll.u32 %s1238_s27, 4  ;;  %s65_s28 = int_to_ptr.vmem [resolvable:$true] %s64_s28 }
  0x25   :  { %s1213_s29 = scalar_lea.vmem %s65_s28, 1024  ;;  %p1218_p2 = scmp.lt.s32.totalorder %s65_s28, %s65_s28 }
  0x26   :  { %p1214_p1 = scmp.ne.s32.totalorder %s65_s28, %s1213_s29  ;;  %p1219_p3 = scmp.lt.s32.totalorder %s1213_s29, %s1213_s29 }
  0x28   :  { %p1220_p4 = por %p1219_p3, %p1218_p2 }
  0x2a   :  { %p1221_p5 = pnand %p1220_p4, %p1214_p1 }
  0x2c   :  { %1224 = shalt.err (!%p1221_p5)
}
  0x2d   :  { %70 = dma.hbm_to_vmem [thread:$0]  %s1348_s7, 1024, %s65_s28, [#allocation8], %s1236_s3, %s1236_s3, %s1237_s24  }
  0x2e   :  { %1225 = dma.done.wait [#allocation3], 384  }
  0x2f   :  { %1226 = vsyncadd [#allocation3], 4294966912 }
  0x30   :  { %1227 = dma.done.wait [#allocation5], 8192  }
  0x31   :  { %1228 = vsyncadd [#allocation5], 4294959104 }
  0x32   :  { %1229 = dma.done.wait [#allocation8], 1024  }
  0x33   :  { %1230 = vsyncadd [#allocation8], 4294966272  ;;  %v1239_v0 = vmov 0   ;;  %v1240_v1 = vmov 2   ;;  %v86_v2 = vld [vmem:[%s1341_s0] sm:$0xff]  ;;  %v1241_v7 = vmov 1   ;;  %v95_v54 = vlaneseq }
  0x34   :  { %1044 = vset.pattern.permute.xlu0 %v1239_v0  ;;  %1046 = vset.pattern.permute.xlu1 %v1240_v1  ;;  %v1049_v3 = vld [vmem:[#allocation4 + $0x74] ss:$8 sps:$4 sm:$0xff]   ;;  %v1051_v4 = vld [vmem:[#allocation4 + $0x70] ss:$8 sps:$4 sm:$0xff]   ;;  %v1052_v5 = vld [vmem:[#allocation4 + $0x64] ss:$8 sps:$4 sm:$0xff]  }
  0x35   :  { %595 = vmatprep.mubr.bf16.mxu1 %v1239_v0  ;;  %91 = vperm.xlu0 %1044, %v86_v2   ;;  %v1054_v6 = vld [vmem:[#allocation4 + $0x60] ss:$8 sps:$4 sm:$0xff]   ;;  %v1242_v8 = vmov 3   ;;  %v1055_v9 = vld [vmem:[#allocation4 + $0x54] ss:$8 sps:$4 sm:$0xff]   ;;  %v96_v55 = vshrl.u32 %v95_v54, 7 }
  0x36   :  { %163 = vperm.xlu1 %1046, %v86_v2   ;;  %522 = vmatprep.subr.bf16.mxu0 %v1049_v3  ;;  %v1057_v10 = vld [vmem:[#allocation4 + $0x50] ss:$8 sps:$4 sm:$0xff]   ;;  %v1058_v11 = vld [vmem:[#allocation4 + $0x44] ss:$8 sps:$4 sm:$0xff]   ;;  %v1073_v12 = vld [vmem:[#allocation4 + $0x174] ss:$8 sps:$4 sm:$0xff]  }
  0x37   :  { %523 = vmatpush1.bf16.msra.mxu0 %v1051_v4  ;;  %v1060_v13 = vld [vmem:[#allocation4 + $0x40] ss:$8 sps:$4 sm:$0xff]   ;;  %v1061_v14 = vld [vmem:[#allocation4 + $0x34] ss:$8 sps:$4 sm:$0xff]   ;;  %563 = vmatprep.subr.bf16.mxu1 %v1073_v12  ;;  %v1077_v15 = vld [vmem:[#allocation4 + $0x170] ss:$8 sps:$4 sm:$0xff]  }
  0x38   :  { %524 = vmatprep.subr.bf16.mxu0 %v1052_v5  ;;  %v1079_v16 = vld [vmem:[#allocation4 + $0x164] ss:$8 sps:$4 sm:$0xff]   ;;  %v1063_v17 = vld [vmem:[#allocation4 + $0x30] ss:$8 sps:$4 sm:$0xff]   ;;  %564 = vmatpush1.bf16.msra.mxu1 %v1077_v15  ;;  %v1083_v18 = vld [vmem:[#allocation4 + $0x160] ss:$8 sps:$4 sm:$0xff]  }
  0x39   :  { %1045 = vset.pattern.permute.xlu0 %v1241_v7  ;;  %v1064_v19 = vld [vmem:[#allocation4 + $0x24] ss:$8 sps:$4 sm:$0xff]   ;;  %565 = vmatprep.subr.bf16.mxu1 %v1079_v16  ;;  %v1085_v20 = vld [vmem:[#allocation4 + $0x154] ss:$8 sps:$4 sm:$0xff]   ;;  %v1066_v21 = vld [vmem:[#allocation4 + $0x20] ss:$8 sps:$4 sm:$0xff]  }
  0x3a   :  { %1047 = vset.pattern.permute.xlu1 %v1242_v8  ;;  %135 = vperm.xlu0 %1045, %v86_v2   ;;  %v1089_v22 = vld [vmem:[#allocation4 + $0x150] ss:$8 sps:$4 sm:$0xff]   ;;  %v1091_v23 = vld [vmem:[#allocation4 + $0x144] ss:$8 sps:$4 sm:$0xff]   ;;  %v1067_v24 = vld [vmem:[#allocation4 + $0x14] ss:$8 sps:$4 sm:$0xff]  }
  0x3b   :  { %191 = vperm.xlu1 %1047, %v86_v2   ;;  %525 = vmatpush1.bf16.msra.mxu0 %v1054_v6  ;;  %v1095_v25 = vld [vmem:[#allocation4 + $0x140] ss:$8 sps:$4 sm:$0xff]   ;;  %v1069_v26 = vld [vmem:[#allocation4 + $0x10] ss:$8 sps:$4 sm:$0xff]   ;;  %v1097_v27 = vld [vmem:[#allocation4 + $0x134] ss:$8 sps:$4 sm:$0xff]  }
  0x3c   :  { %526 = vmatprep.subr.bf16.mxu0 %v1055_v9  ;;  %566 = vmatpush1.bf16.msra.mxu1 %v1083_v18  ;;  %v1070_v28 = vld [vmem:[#allocation4 + $0x4] ss:$8 sps:$4 sm:$0xff]   ;;  %v1101_v29 = vld [vmem:[#allocation4 + $0x130] ss:$8 sps:$4 sm:$0xff]   ;;  %v1072_v30 = vld [vmem:[#allocation4] ss:$8 sps:$4 sm:$0xff]  }
  0x3d   :  { %567 = vmatprep.subr.bf16.mxu1 %v1085_v20  ;;  %v1103_v31 = vld [vmem:[#allocation4 + $0x124] ss:$8 sps:$4 sm:$0xff]   ;;  %v1075_v32 = vld [vmem:[#allocation4 + $0xf4] ss:$8 sps:$4 sm:$0xff]   ;;  %v1078_v33 = vld [vmem:[#allocation4 + $0xf0] ss:$8 sps:$4 sm:$0xff]  }
  0x3e   :  { %1048 = vset.pattern.permute.xlu0 %v1242_v8  ;;  %v1107_v34 = vld [vmem:[#allocation4 + $0x120] ss:$8 sps:$4 sm:$0xff]   ;;  %v1109_v35 = vld [vmem:[#allocation4 + $0x114] ss:$8 sps:$4 sm:$0xff]   ;;  %v1081_v36 = vld [vmem:[#allocation4 + $0xe4] ss:$8 sps:$4 sm:$0xff]  }
  0x3f   :  { %527 = vmatpush1.bf16.msra.mxu0 %v1057_v10  ;;  %v1084_v37 = vld [vmem:[#allocation4 + $0xe0] ss:$8 sps:$4 sm:$0xff]   ;;  %v1113_v38 = vld [vmem:[#allocation4 + $0x110] ss:$8 sps:$4 sm:$0xff]   ;;  %v1115_v39 = vld [vmem:[#allocation4 + $0x104] ss:$8 sps:$4 sm:$0xff]  }
  0x40   :  { %528 = vmatprep.subr.bf16.mxu0 %v1058_v11  ;;  %568 = vmatpush1.bf16.msra.mxu1 %v1089_v22  ;;  %v1087_v40 = vld [vmem:[#allocation4 + $0xd4] ss:$8 sps:$4 sm:$0xff]   ;;  %v1090_v41 = vld [vmem:[#allocation4 + $0xd0] ss:$8 sps:$4 sm:$0xff]   ;;  %v1119_v42 = vld [vmem:[#allocation4 + $0x100] ss:$8 sps:$4 sm:$0xff]  }
  0x41   :  { %569 = vmatprep.subr.bf16.mxu1 %v1091_v23  ;;  %v1121_v43 = vld [vmem:[#allocation6 + $0x78] sm:$0xff]   ;;  %v1093_v44 = vld [vmem:[#allocation4 + $0xc4] ss:$8 sps:$4 sm:$0xff]   ;;  %v1096_v45 = vld [vmem:[#allocation4 + $0xc0] ss:$8 sps:$4 sm:$0xff]   ;;  %v1310_v56 = vsub.s32 0, %v96_v55 }
  0x42   :  { %v1099_v46 = vld [vmem:[#allocation4 + $0xb4] ss:$8 sps:$4 sm:$0xff]   ;;  %v1102_v47 = vld [vmem:[#allocation4 + $0xb0] ss:$8 sps:$4 sm:$0xff]   ;;  %v1105_v48 = vld [vmem:[#allocation4 + $0xa4] ss:$8 sps:$4 sm:$0xff]  }
  0x43   :  { %529 = vmatpush1.bf16.msra.mxu0 %v1060_v13  ;;  %v1108_v49 = vld [vmem:[#allocation4 + $0xa0] ss:$8 sps:$4 sm:$0xff]   ;;  %v1111_v50 = vld [vmem:[#allocation4 + $0x94] ss:$8 sps:$4 sm:$0xff]   ;;  %v1114_v51 = vld [vmem:[#allocation4 + $0x90] ss:$8 sps:$4 sm:$0xff]  }
  0x44   :  { %530 = vmatprep.subr.bf16.mxu0 %v1061_v14  ;;  %570 = vmatpush1.bf16.msra.mxu1 %v1095_v25  ;;  %v1117_v52 = vld [vmem:[#allocation4 + $0x84] ss:$8 sps:$4 sm:$0xff]   ;;  %v1120_v53 = vld [vmem:[#allocation4 + $0x80] ss:$8 sps:$4 sm:$0xff]   ;;  %v1312_v57 = vsub.s32 1, %v96_v55  ;;  %v105_v59 = vsub.s32 2, %v96_v55 }
  0x45   :  { %571 = vmatprep.subr.bf16.mxu1 %v1097_v27  ;;  %v88_v58 = vld [vmem:[#allocation2] ss:$8 sm:$0x7]  ;;  %v161_v0 = vld [vmem:[#allocation2 + $0x2] ss:$8 sm:$0x7] }
  0x46   :  { %v87_v60 = vld [vmem:[%s1343_s2] sm:$0x7]  ;;  %v98_v61 = vrot.slane %v88_v58, %v1310_v56  ;;  %v102_v62 = vrot.slane %v88_v58, %v1312_v57  ;;  %v106_v63 = vrot.slane %v88_v58, %v105_v59  ;;  %v189_v6 = vld [vmem:[#allocation2 + $0x3] ss:$8 sm:$0x7]  ;;  %v170_v10 = vrot.slane %v161_v0, %v1310_v56  ;;  %v1127_v54 = vld [vmem:[#allocation6 + $0x60] sm:$0xff]  }
  0x47   :  { %531 = vmatpush1.bf16.msra.mxu0 %v1063_v17  ;;  %v133_v1 = vld [vmem:[#allocation2 + $0x1] ss:$8 sm:$0x7]  ;;  %v117_v2 = vrot.slane %v87_v60, %v1310_v56  ;;  %v121_v3 = vrot.slane %v87_v60, %v1312_v57  ;;  %v125_v7 = vrot.slane %v87_v60, %v105_v59  ;;  %v174_v15 = vrot.slane %v161_v0, %v1312_v57  ;;  %v1128_v55 = vld [vmem:[#allocation6 + $0x20] sm:$0xff]  }
  0x48   :  { %532 = vmatprep.subr.bf16.mxu0 %v1064_v19  ;;  %572 = vmatpush1.bf16.msra.mxu1 %v1101_v29  ;;  %v142_v12 = vrot.slane %v133_v1, %v1310_v56  ;;  %v146_v13 = vrot.slane %v133_v1, %v1312_v57  ;;  %v150_v14 = vrot.slane %v133_v1, %v105_v59  ;;  %v1129_v58 = vld [vmem:[#allocation6 + $0x58] sm:$0xff]   ;;  %v1131_v60 = vld [vmem:[#allocation6 + $0x50] sm:$0xff]   ;;  %v1136_v1 = vld [vmem:[#allocation6] sm:$0xff]   ;;  %vm1244_vm0 = vmmov 0  }
  0x49   :  { %573 = vmatprep.subr.bf16.mxu1 %v1103_v31  ;;  %v178_v16 = vrot.slane %v161_v0, %v105_v59  ;;  %v198_v17 = vrot.slane %v189_v6, %v1310_v56  ;;  %v202_v18 = vrot.slane %v189_v6, %v1312_v57  ;;  %v206_v19 = vrot.slane %v189_v6, %v105_v59  ;;  %v1130_v59 = vld [vmem:[#allocation6 + $0x18] sm:$0xff]   ;;  %v1135_v0 = vld [vmem:[#allocation6 + $0x40] sm:$0xff]  }
  0x4a   :  { %v1140_v6 = vld [vmem:[#allocation7 + $0x20] sm:$0xff]   ;;  %vm896_vm1 = vcmask 15360  }
  0x4b   :  { %533 = vmatpush1.bf16.msra.mxu0 %v1066_v21 }
  0x4c   :  { %534 = vmatprep.subr.bf16.mxu0 %v1067_v24  ;;  %574 = vmatpush1.bf16.msra.mxu1 %v1107_v34 }
  0x4d   :  { %575 = vmatprep.subr.bf16.mxu1 %v1109_v35 }
  0x4f   :  { %535 = vmatpush1.bf16.msra.mxu0 %v1069_v26 }
  0x50   :  { %536 = vmatprep.subr.bf16.mxu0 %v1070_v28  ;;  %576 = vmatpush1.bf16.msra.mxu1 %v1113_v38 }
  0x51   :  { %577 = vmatprep.subr.bf16.mxu1 %v1115_v39 }
  0x53   :  { %537 = vmatpush1.bf16.msra.mxu0 %v1072_v30 }
  0x54   :  { %538 = vmatprep.subr.bf16.mxu0 %v1075_v32  ;;  %578 = vmatpush1.bf16.msra.mxu1 %v1119_v42 }
  0x55   :  { %979 = vmatprep.subr.bf16.mxu1 %v1121_v43 }
  0x57   :  { %539 = vmatpush2.bf16.msra.mxu0 %v1078_v33 }
  0x58   :  { %540 = vmatprep.subr.bf16.mxu0 %v1081_v36 }
  0x5b   :  { %541 = vmatpush2.bf16.msra.mxu0 %v1084_v37 }
  0x5c   :  { %542 = vmatprep.subr.bf16.mxu0 %v1087_v40 }
  0x5f   :  { %543 = vmatpush2.bf16.msra.mxu0 %v1090_v41 }
  0x60   :  { %544 = vmatprep.subr.bf16.mxu0 %v1093_v44 }
  0x63   :  { %545 = vmatpush2.bf16.msra.mxu0 %v1096_v45 }
  0x64   :  { %546 = vmatprep.subr.bf16.mxu0 %v1099_v46  ;;  %v1122_v46 = vld [vmem:[#allocation6 + $0x38] sm:$0xff]  }
  0x67   :  { %547 = vmatpush2.bf16.msra.mxu0 %v1102_v47 }
  0x68   :  { %548 = vmatprep.subr.bf16.mxu0 %v1105_v48 }
  0x6b   :  { %549 = vmatpush2.bf16.msra.mxu0 %v1108_v49 }
  0x6c   :  { %550 = vmatprep.subr.bf16.mxu0 %v1111_v50  ;;  %v1123_v50 = vld [vmem:[#allocation6 + $0x70] sm:$0xff]  }
  0x6f   :  { %551 = vmatpush2.bf16.msra.mxu0 %v1114_v51  ;;  %v1124_v51 = vld [vmem:[#allocation6 + $0x30] sm:$0xff]  }
  0x70   :  { %552 = vmatprep.subr.bf16.mxu0 %v1117_v52  ;;  %v1125_v52 = vld [vmem:[#allocation6 + $0x68] sm:$0xff]  }
  0x73   :  { %553 = vmatpush2.bf16.msra.mxu0 %v1120_v53  ;;  %v1126_v53 = vld [vmem:[#allocation6 + $0x28] sm:$0xff]  }
  0xb0   :  { %v92_v4 = vpop.permute.xlu0 %91 }
  0xb1   :  { %v164_v5 = vpop.permute.xlu1 %163  ;;  %v110_v8 = vmul.f32 %v98_v61, %v92_v4  ;;  %v111_v9 = vmul.f32 %v102_v62, %v92_v4  ;;  %v112_v11 = vmul.f32 %v106_v63, %v92_v4  ;;  %v1132_v61 = vld [vmem:[#allocation6 + $0x10] sm:$0xff]   ;;  %v1133_v62 = vld [vmem:[#allocation6 + $0x48] sm:$0xff]  }
  0xb2   :  { %v182_v22 = vmul.f32 %v170_v10, %v164_v5  ;;  %v183_v29 = vmul.f32 %v174_v15, %v164_v5  ;;  %v184_v30 = vmul.f32 %v178_v16, %v164_v5  ;;  %v1134_v63 = vld [vmem:[#allocation6 + $0x8] sm:$0xff]   ;;  %v1138_v4 = vld [vmem:[#allocation7 + $0x30] sm:$0xff]  }
  0xb3   :  { %v129_v20 = vadd.f32 %v117_v2, %v110_v8  ;;  %v130_v21 = vadd.f32 %v121_v3, %v111_v9  ;;  %v131_v25 = vadd.f32 %v125_v7, %v112_v11  ;;  %v1137_v2 = vld [vmem:[#allocation7 + $0x38] sm:$0xff]   ;;  %v1243_v3 = vmov 0.0   ;;  %v1139_v5 = vld [vmem:[#allocation7 + $0x28] sm:$0xff]  }
  0xb4   :  { %1010 = vmatprep.subr.bf16.mxu0 %v1243_v3  ;;  %v1141_v7 = vld [vmem:[#allocation7 + $0x18] sm:$0xff]   ;;  %v270_v8 = vld [vmem:[%s1345_s4] sm:$0x3] }
  0xb5   :  { %v136_v23 = vpop.permute.xlu0 %135  ;;  %v275_v9 = vrot.slane %v270_v8, %v1310_v56  ;;  %v279_v11 = vrot.slane %v270_v8, %v1312_v57  ;;  %v1142_v56 = vld [vmem:[#allocation7 + $0x10] sm:$0xff]   ;;  %v1143_v57 = vld [vmem:[#allocation7 + $0x8] sm:$0xff]  }
  0xb6   :  { %v192_v24 = vpop.permute.xlu1 %191  ;;  %v154_v26 = vmul.f32 %v142_v12, %v136_v23  ;;  %v155_v27 = vmul.f32 %v146_v13, %v136_v23  ;;  %v156_v28 = vmul.f32 %v150_v14, %v136_v23 }
  0xb7   :  { %v210_v31 = vmul.f32 %v198_v17, %v192_v24  ;;  %v211_v32 = vmul.f32 %v202_v18, %v192_v24  ;;  %v212_v36 = vmul.f32 %v206_v19, %v192_v24 }
  0xb8   :  { %v157_v33 = vadd.f32 %v154_v26, %v129_v20  ;;  %v158_v34 = vadd.f32 %v155_v27, %v130_v21  ;;  %v159_v35 = vadd.f32 %v156_v28, %v131_v25  ;;  %v1144_v27 = vld [vmem:[#allocation7] sm:$0xff]  }
  0xba   :  { %v185_v37 = vadd.f32 %v182_v22, %v157_v33  ;;  %v187_v38 = vadd.f32 %v184_v30, %v159_v35  ;;  %v186_v39 = vadd.f32 %v183_v29, %v158_v34  ;;  %v953_v29 = vld [vmem:[%s1347_s6] ss:$0 sm:$0xff] }
  0xbc   :  { %v213_v40 = vadd.f32 %v210_v31, %v185_v37  ;;  %v215_v41 = vadd.f32 %v212_v36, %v187_v38  ;;  %v214_v42 = vadd.f32 %v211_v32, %v186_v39  ;;  %v970_v37 = vld [vmem:[%s1349_s8] ss:$0 sm:$0xff] }
  0xbe   :  { %v216_v43 = vmax.f32 %v213_v40, 0.0  ;;  %v218_v44 = vmax.f32 %v215_v41, 0.0  ;;  %v217_v45 = vmax.f32 %v214_v42, 0.0 }
  0xc0   :  { %v220_v47 = vpack.c.bf16 %v217_v45, %v217_v45  ;;  %v221_v48 = vpack.c.bf16 %v218_v44, %v218_v44  ;;  %v219_v49 = vpack.c.bf16 %v216_v43, %v216_v43 }
  0xc2   :  { %554 = vmatprep.mubr.bf16.mxu0 %v220_v47  ;;  %596 = vmatmul.mubr.bf16.vlgmr.msra.gmra.mxu1 %v221_v48 }
  0xc3   :  { %555 = vmatmul.mubr.bf16.vlgmr.msra.gmra.mxu0 %v219_v49  ;;  %980 = vmatpush3.bf16.msra.mxu1 %v1122_v46 }
  0xc4   :  { %981 = vmatprep.subr.bf16.mxu1 %v1123_v50  ;;  %1011 = vmatpush3.bf16.msra.mxu0 %v1137_v2 }
  0xc5   :  { %1012 = vmatprep.subr.bf16.mxu0 %v1243_v3  ;;  %1026 = vmatprep.mubr.msk.bf16.mxu0 %vm1244_vm0, %v1243_v3 }
  0xc7   :  { %982 = vmatpush3.bf16.msra.mxu1 %v1124_v51 }
  0xc8   :  { %983 = vmatprep.subr.bf16.mxu1 %v1125_v52  ;;  %1013 = vmatpush3.bf16.msra.mxu0 %v1138_v4 }
  0xc9   :  { %1014 = vmatprep.subr.bf16.mxu0 %v1243_v3 }
  0xcb   :  { %984 = vmatpush3.bf16.msra.mxu1 %v1126_v53 }
  0xcc   :  { %985 = vmatprep.subr.bf16.mxu1 %v1127_v54  ;;  %1015 = vmatpush3.bf16.msra.mxu0 %v1139_v5 }
  0xcd   :  { %1016 = vmatprep.subr.bf16.mxu0 %v1243_v3 }
  0xcf   :  { %986 = vmatpush3.bf16.msra.mxu1 %v1128_v55 }
  0xd0   :  { %987 = vmatprep.subr.bf16.mxu1 %v1129_v58  ;;  %1017 = vmatpush3.bf16.msra.mxu0 %v1140_v6 }
  0xd1   :  { %1018 = vmatprep.subr.bf16.mxu0 %v1243_v3 }
  0xd3   :  { %988 = vmatpush3.bf16.msra.mxu1 %v1130_v59 }
  0xd4   :  { %989 = vmatprep.subr.bf16.mxu1 %v1131_v60  ;;  %1019 = vmatpush3.bf16.msra.mxu0 %v1141_v7 }
  0xd5   :  { %1020 = vmatprep.subr.bf16.mxu0 %v1243_v3 }
  0xd7   :  { %990 = vmatpush3.bf16.msra.mxu1 %v1132_v61 }
  0xd8   :  { %991 = vmatprep.subr.bf16.mxu1 %v1133_v62  ;;  %1021 = vmatpush3.bf16.msra.mxu0 %v1142_v56 }
  0xd9   :  { %1022 = vmatprep.subr.bf16.mxu0 %v1243_v3 }
  0xdb   :  { %992 = vmatpush3.bf16.msra.mxu1 %v1134_v63 }
  0xdc   :  { %993 = vmatprep.subr.bf16.mxu1 %v1135_v0  ;;  %1023 = vmatpush3.bf16.msra.mxu0 %v1143_v57 }
  0xdd   :  { %1024 = vmatprep.subr.bf16.mxu0 %v1243_v3 }
  0xdf   :  { %994 = vmatpush3.bf16.msra.mxu1 %v1136_v1 }
  0xe0   :  { %1025 = vmatpush3.bf16.msra.mxu0 %v1144_v27 }
 0x182   :  { %v597_v10 = vpop.f32.mrf.mxu1 }
 0x183   :  { %v556_v12 = vpop.f32.mrf.mxu0 }
 0x184   :  { %v557_v13 = vadd.f32 %v556_v12, %v275_v9  ;;  %v599_v14 = vpop.f32.mrf.mxu1 }
 0x185   :  { %v558_v15 = vpop.f32.mrf.mxu0 }
 0x186   :  { %v598_v16 = vadd.f32 %v597_v10, %v557_v13  ;;  %v559_v17 = vadd.f32 %v558_v15, %v279_v11  ;;  %v601_v18 = vpop.f32.mrf.mxu1 }
 0x187   :  { %v560_v19 = vpop.f32.mrf.mxu0 }
 0x188   :  { %v600_v20 = vadd.f32 %v599_v14, %v559_v17  ;;  %v602_v21 = vpop.f32.mrf.mxu1  ;;  %v604_v22 = vmax.f32 %v598_v16, 0.0 }
 0x189   :  { %v561_v23 = vpop.f32.mrf.mxu0 }
 0x18a   :  { %v605_v24 = vmax.f32 %v600_v20, 0.0  ;;  %v606_v26 = vpack.c.bf16 %v604_v22, %v604_v22 }
 0x18c   :  { %v607_v25 = vpack.c.bf16 %v605_v24, %v605_v24 }
 0x18e   :  { %775 = vmatprep.mubr.bf16.mxu1 %v607_v25 }
 0x18f   :  { %776 = vmatmul.mubr.bf16.vlgmr.msra.gmra.mxu1 %v606_v26 }
 0x24f   :  { %v995_v28 = vpop.f32.mrf.mxu1 }
 0x251   :  { %v996_v30 = vpop.f32.mrf.mxu1 }
 0x252   :  { %v997_v31 = vadd.f32 %v996_v30, %v995_v28 }
 0x253   :  { %v998_v32 = vpop.f32.mrf.mxu1 }
 0x254   :  { %v778_v33 = vadd.f32 %v997_v31, %v953_v29 }
 0x255   :  { %v999_v34 = vpop.f32.mrf.mxu1 }
 0x256   :  { %v783_v35 = vmax.f32 %v778_v33, 0.0 }
 0x258   :  { %v784_v36 = vpack.c.bf16 %v783_v35, %v783_v35 }
 0x25a   :  { %1027 = vmatmul.mubr.bf16.vlgmr.msra.gmra.mxu0 %v784_v36 }
 0x31a   :  { %v890_v38 = vpop.f32.mrf.mxu0 }
 0x31b   :  { %v891_v39 = vadd.f32 %v970_v37, %v890_v38 }
 0x31c   :  { %v1028_v40 = vpop.f32.mrf.mxu0 }
 0x31d   :  { %897 = vst.msk [vmem:[%s1350_s9] sm:$0xff] %vm896_vm1, %v891_v39 }
 0x31e   :  { %v893_v41 = vpop.f32.mrf.mxu0 }
 0x320   :  { %v1029_v42 = vpop.f32.mrf.mxu0 }
 0x321   :  { %902 = vsyncpa [#allocation3], 1 }
 0x322   :  { %903 = vsyncpa [#allocation5], 1 }
 0x323   :  { %904 = vsyncpa [#allocation8], 1 }

</bundles_post_ra>
